<compile_context>
chip_gen: v7x
topology: tpu7x:2x2x1
jax: 0.10.0
libtpu: 0.0.40
codegen_flags: <defaults>
</compile_context>

<pallas_src>
import functools

import jax
import jax.numpy as jnp
from jax import lax
from jax.experimental import pallas as pl
from jax.experimental.pallas import tpu as pltpu


def _round_up(x, m):
    return (x + m - 1) // m * m


def _static_int_pow(x, p):
    """x**p for a static non-negative integer p using only multiplies (VALU)."""
    if p == 0:
        return jnp.ones_like(x)
    result = None
    base = x
    while p:
        if p & 1:
            result = base if result is None else result * base
        p >>= 1
        if p:
            base = base * base
    return result


def _focal_loss_kernel(logits_ref, target_ref, weight_ref, out_ref, *,
                       gamma, ignore_index, n_rows):
    x = logits_ref[...].astype(jnp.float32)           # [TN, C]
    t = target_ref[...]                                # [TN, 1] int32
    w = weight_ref[...].astype(jnp.float32)            # [1, C]
    tn, c = x.shape

    # Target mask kept as a predicate (never an f32 one-hot temporary).
    col = lax.broadcasted_iota(jnp.int32, (tn, c), 1)
    tmask = col == t                                    # [TN, C] bool

    # Row-wise log-sum-exp needs the full row ...
    m = jnp.max(x, axis=1, keepdims=True)               # [TN, 1]
    se = jnp.sum(jnp.exp(x - m), axis=1, keepdims=True)
    lse = jnp.log(se)

    # ... but the focal modulation is applied only to the gathered target
    # column ([TN,1]) — no full-tile second exp / pow.
    x_t = jnp.sum(jnp.where(tmask, x, 0.0), axis=1, keepdims=True)   # logit
    w_t = jnp.sum(jnp.where(tmask, w, 0.0), axis=1, keepdims=True)   # weight
    logpt_t = x_t - m - lse                              # log p_target [TN,1]
    pt_t = jnp.exp(logpt_t)
    omp = jnp.maximum(1.0 - pt_t, 0.0)                   # clamp: no NaN at pt~1

    g = float(gamma)
    if g == int(g) and int(g) >= 0:
        mod = _static_int_pow(omp, int(g))               # multiplies only
    else:
        mod = omp ** g                                   # EUP fallback
    focal_t = mod * logpt_t                              # [TN, 1]

    # Validity: real (non-padded) row AND target != ignore_index.  Out-of-range
    # rows of a partial trailing block hold undefined data, so everything they
    # touch is discarded through jnp.where (NaN-safe), never by multiplication.
    row = lax.broadcasted_iota(jnp.int32, (tn, 1), 0) + pl.program_id(0) * tn
    valid = jnp.logical_and(t != ignore_index, row < n_rows)

    num = -jnp.sum(jnp.where(valid, focal_t * w_t, 0.0))   # scalar partials
    den = jnp.sum(jnp.where(valid, w_t, 0.0))

    # Per-tile partial (num, den) written into a lane-dense (8,128) slab.
    r8 = lax.broadcasted_iota(jnp.int32, (8, 128), 0)
    l8 = lax.broadcasted_iota(jnp.int32, (8, 128), 1)
    blk = (jnp.where((r8 == 0) & (l8 == 0), num, 0.0)
           + jnp.where((r8 == 0) & (l8 == 1), den, 0.0))
    out_ref[0] = blk


def focal_loss(logits, target, weight=None, *, gamma=2, ignore_index=-100,
               block_rows=None):
    """logits: [N, C] float (f32 or bf16), target: [N] int, weight: optional [C]."""
    n, c = logits.shape
    dtype = logits.dtype
    itemsize = jnp.dtype(dtype).itemsize
    if weight is None:
        weight = jnp.ones((c,), dtype=jnp.float32)

    # Physical lane width of one logits row once it lands in VMEM.
    c_lane = _round_up(c, 128)

    # Per-core VMEM: 128 MiB on v5e/v6e, 64 MiB on v7x.  Fall back to the
    # smallest (v7x-safe) figure if the trace-time query is unavailable.
    try:
        vmem_cap = int(pltpu.get_tpu_info().vmem_capacity_bytes)
    except Exception:
        vmem_cap = 64 * 1024 * 1024
    vmem_limit = int(min((vmem_cap * 3) // 4, 96 * 1024 * 1024))

    if block_rows is None:
        # Per-row footprint: 2x double-buffered logits tile + ~3 f32 in-kernel
        # [TN,C] temporaries + lane-padded (TN,1) int32 target block
        # (512 B/row, x2 buffers).
        per_row = 2 * c_lane * itemsize + 3 * c_lane * 4 + 2 * 512
        budget = max(per_row * 8, vmem_limit - 4 * 1024 * 1024)
        tn = int(max(8, min(8192, budget // per_row)))
    else:
        tn = int(max(8, block_rows))
    tn = _round_up(tn, 8)
    tn = min(tn, _round_up(n, 8))
    if n < 8:
        tn = n  # block dim equal to full array dim satisfies the (8,128) rule
    # Keep >= 2 grid steps when possible so the ("parallel",) axis can shard
    # across the two TensorCores on v7x.
    if block_rows is None and tn >= n and n > 8:
        tn = _round_up(-(-n // 2), 8)
    num_tiles = -(-n // tn)

    target2d = target.astype(jnp.int32).reshape(n, 1)
    weight2d = weight.astype(jnp.float32).reshape(1, c)

    kernel = functools.partial(_focal_loss_kernel, gamma=float(gamma),
                               ignore_index=int(ignore_index), n_rows=int(n))

    partials = pl.pallas_call(
        kernel,
        out_shape=jax.ShapeDtypeStruct((num_tiles, 8, 128), jnp.float32),
        grid=(num_tiles,),
        in_specs=[
            pl.BlockSpec((tn, c), lambda i: (i, 0)),   # logits tile (full C)
            pl.BlockSpec((tn, 1), lambda i: (i, 0)),   # target tile
            pl.BlockSpec((1, c), lambda i: (0, 0)),    # weights (resident)
        ],
        out_specs=pl.BlockSpec((1, 8, 128), lambda i: (i, 0, 0)),
        compiler_params=pltpu.CompilerParams(
            dimension_semantics=("parallel",),
            vmem_limit_bytes=vmem_limit),
    )(logits, target2d, weight2d)

    num = jnp.sum(partials[:, 0, 0])
    den = jnp.sum(partials[:, 0, 1])
    # NOTE: if every row is ignored, den == 0 and this returns NaN/Inf, which
    # matches the pure-JAX / PyTorch behavior.
    return num / den


def _focal_loss_ref(logits, target, weight=None, *, gamma=2, ignore_index=-100):
    """Pure-JAX reference mirroring the PyTorch module."""
    logits = logits.astype(jnp.float32)
    n, c = logits.shape
    if weight is None:
        weight = jnp.ones((c,), dtype=jnp.float32)
    logpt = jax.nn.log_softmax(logits, axis=1)
    pt = jnp.exp(logpt)
    focal = (1.0 - pt) ** gamma * logpt
    valid = (target != ignore_index)
    safe_t = jnp.where(valid, target, 0)
    picked = focal[jnp.arange(n), safe_t]
    w_row = weight[safe_t]
    vm = valid.astype(jnp.float32)
    return -jnp.sum(picked * w_row * vm) / jnp.sum(w_row * vm)


if __name__ == "__main__":
    key = jax.random.PRNGKey(0)
    k1, k2, k3 = jax.random.split(key, 3)

    # Test 1: small shapes consistent with the module, explicit class weights,
    # one ignored row.  Single tile, C not a multiple of 128 (no padding pass).
    N, C = 8, 16
    logits = jax.random.normal(k1, (N, C), dtype=jnp.float32)
    target = jax.random.randint(k2, (N,), 0, C, dtype=jnp.int32)
    target = target.at[3].set(-100)          # exercise ignore_index
    weight = jax.random.uniform(k3, (C,), dtype=jnp.float32) + 0.5

    loss = focal_loss(logits, target, weight, gamma=2, ignore_index=-100)
    jax.block_until_ready(loss)
    ref = _focal_loss_ref(logits, target, weight, gamma=2, ignore_index=-100)
    assert jnp.allclose(loss, ref, atol=1e-4, rtol=1e-4), (loss, ref)

    # Test 2: forced small tile -> grid of 3 with a partial trailing block
    # (row-index masking + cross-tile reduction).
    N2 = 40
    logits2 = jax.random.normal(k1, (N2, C), dtype=jnp.float32)
    target2 = jax.random.randint(k2, (N2,), 0, C, dtype=jnp.int32)
    loss2 = focal_loss(logits2, target2, gamma=2, ignore_index=-100,
                       block_rows=16)
    jax.block_until_ready(loss2)
    ref2 = _focal_loss_ref(logits2, target2, gamma=2, ignore_index=-100)
    assert jnp.allclose(loss2, ref2, atol=1e-4, rtol=1e-4), (loss2, ref2)

    # Test 3: automatic tiling path (>= 2 tiles for megacore), odd C (lane
    # masking inside Mosaic), weights + scattered ignore_index rows.
    N3, C3 = 200, 177
    logits3 = jax.random.normal(k1, (N3, C3), dtype=jnp.float32)
    target3 = jax.random.randint(k2, (N3,), 0, C3, dtype=jnp.int32)
    target3 = target3.at[0].set(-100).at[150].set(-100)
    weight3 = jax.random.uniform(k3, (C3,), dtype=jnp.float32) + 0.5
    loss3 = focal_loss(logits3, target3, weight3, gamma=2, ignore_index=-100)
    jax.block_until_ready(loss3)
    ref3 = _focal_loss_ref(logits3, target3, weight3, gamma=2,
                           ignore_index=-100)
    assert jnp.allclose(loss3, ref3, atol=1e-4, rtol=1e-4), (loss3, ref3)

    print("KERNEL_OK")
</pallas_src>

<mosaic_0001>
module attributes {stable_mosaic.version = 11 : i64} {
  func.func @_focal_loss_kernel(%arg0: i32, %arg1: memref<8x16xf32, #tpu.memory_space<vmem>>, %arg2: memref<8x1xi32, #tpu.memory_space<vmem>>, %arg3: memref<1x16xf32, #tpu.memory_space<vmem>>, %arg4: memref<1x8x128xf32, #tpu.memory_space<vmem>>) attributes {dimension_semantics = [#tpu.dimension_semantics<parallel>], iteration_bounds = array<i64: 1>, scalar_prefetch = 0 : i64, scratch_operands = 0 : i64, tpu.core_type = #tpu.core_type<tc>, window_params = [{transform_indices = @transform_0, window_bounds = array<i64: 8, 16>}, {transform_indices = @transform_1, window_bounds = array<i64: 8, 1>}, {pipeline_mode = #tpu.pipeline_mode<synchronous>, transform_indices = @transform_2, window_bounds = array<i64: 1, 16>}, {transform_indices = @transform_3, window_bounds = array<i64: 1, 8, 128>}]} {
    %c0 = arith.constant 0 : index
    %c0_0 = arith.constant 0 : index
    %0 = vector.load %arg1[%c0, %c0_0] : memref<8x16xf32, #tpu.memory_space<vmem>>, vector<8x16xf32>
    %c0_1 = arith.constant 0 : index
    %c0_2 = arith.constant 0 : index
    %1 = vector.load %arg2[%c0_1, %c0_2] : memref<8x1xi32, #tpu.memory_space<vmem>>, vector<8x1xi32>
    %c0_3 = arith.constant 0 : index
    %c0_4 = arith.constant 0 : index
    %2 = vector.load %arg3[%c0_3, %c0_4] : memref<1x16xf32, #tpu.memory_space<vmem>>, vector<1x16xf32>
    %3 = tpu.iota {dimensions = array<i32: 1>} : vector<8x16xi32>
    %4 = vector.broadcast %1 : vector<8x1xi32> to vector<8x16xi32>
    %5 = arith.cmpi eq, %3, %4 : vector<8x16xi32>
    %cst = arith.constant dense<0xFF800000> : vector<8xf32>
    %6 = vector.multi_reduction <maximumf>, %0, %cst [1] : vector<8x16xf32> to vector<8xf32>
    %7 = vector.shape_cast %6 : vector<8xf32> to vector<8x1xf32>
    %8 = vector.broadcast %7 : vector<8x1xf32> to vector<8x16xf32>
    %9 = arith.subf %0, %8 : vector<8x16xf32>
    %10 = math.exp %9 : vector<8x16xf32>
    %cst_5 = arith.constant dense<0.000000e+00> : vector<8xf32>
    %11 = vector.multi_reduction <add>, %10, %cst_5 [1] : vector<8x16xf32> to vector<8xf32>
    %12 = vector.shape_cast %11 : vector<8xf32> to vector<8x1xf32>
    %13 = math.log %12 : vector<8x1xf32>
    %cst_6 = arith.constant 0.000000e+00 : f32
    %14 = vector.broadcast %cst_6 : f32 to vector<8x16xf32>
    %15 = arith.select %5, %0, %14 : vector<8x16xi1>, vector<8x16xf32>
    %cst_7 = arith.constant dense<0.000000e+00> : vector<8xf32>
    %16 = vector.multi_reduction <add>, %15, %cst_7 [1] : vector<8x16xf32> to vector<8xf32>
    %17 = vector.shape_cast %16 : vector<8xf32> to vector<8x1xf32>
    %cst_8 = arith.constant 0.000000e+00 : f32
    %18 = vector.shape_cast %2 : vector<1x16xf32> to vector<1x16xf32>
    %19 = vector.broadcast %18 : vector<1x16xf32> to vector<8x16xf32>
    %20 = vector.broadcast %cst_8 : f32 to vector<8x16xf32>
    %21 = arith.select %5, %19, %20 : vector<8x16xi1>, vector<8x16xf32>
    %cst_9 = arith.constant dense<0.000000e+00> : vector<8xf32>
    %22 = vector.multi_reduction <add>, %21, %cst_9 [1] : vector<8x16xf32> to vector<8xf32>
    %23 = vector.shape_cast %22 : vector<8xf32> to vector<8x1xf32>
    %24 = arith.subf %17, %7 : vector<8x1xf32>
    %25 = arith.subf %24, %13 : vector<8x1xf32>
    %26 = math.exp %25 : vector<8x1xf32>
    %cst_10 = arith.constant 1.000000e+00 : f32
    %27 = vector.broadcast %cst_10 : f32 to vector<8x1xf32>
    %28 = arith.subf %27, %26 : vector<8x1xf32>
    %cst_11 = arith.constant 0.000000e+00 : f32
    %29 = vector.broadcast %cst_11 : f32 to vector<8x1xf32>
    %30 = arith.maximumf %28, %29 : vector<8x1xf32>
    %31 = arith.mulf %30, %30 : vector<8x1xf32>
    %32 = arith.mulf %31, %25 : vector<8x1xf32>
    %33 = tpu.iota {dimensions = array<i32: 0>} : vector<8x1xi32>
    %c8_i32 = arith.constant 8 : i32
    %34 = arith.muli %arg0, %c8_i32 : i32
    %35 = vector.broadcast %34 : i32 to vector<8x1xi32>
    %36 = arith.addi %33, %35 : vector<8x1xi32>
    %c-100_i32 = arith.constant -100 : i32
    %37 = vector.broadcast %c-100_i32 : i32 to vector<8x1xi32>
    %38 = arith.cmpi ne, %1, %37 : vector<8x1xi32>
    %c8_i32_12 = arith.constant 8 : i32
    %39 = vector.broadcast %c8_i32_12 : i32 to vector<8x1xi32>
    %40 = arith.cmpi slt, %36, %39 : vector<8x1xi32>
    %41 = arith.andi %38, %40 : vector<8x1xi1>
    %42 = arith.mulf %32, %23 : vector<8x1xf32>
    %cst_13 = arith.constant 0.000000e+00 : f32
    %43 = vector.broadcast %cst_13 : f32 to vector<8x1xf32>
    %44 = arith.select %41, %42, %43 : vector<8x1xi1>, vector<8x1xf32>
    %45 = vector.shape_cast %44 : vector<8x1xf32> to vector<1x8x1xf32>
    %cst_14 = arith.constant dense<0.000000e+00> : vector<1xf32>
    %46 = vector.multi_reduction <add>, %45, %cst_14 [1, 2] : vector<1x8x1xf32> to vector<1xf32>
    %47 = vector.shape_cast %46 : vector<1xf32> to vector<1x1x1xf32>
    %48 = vector.extract %47[0, 0, 0] : f32 from vector<1x1x1xf32>
    %cst_15 = arith.constant 0.000000e+00 : f32
    %49 = arith.subf %cst_15, %48 : f32
    %cst_16 = arith.constant 0.000000e+00 : f32
    %50 = vector.broadcast %cst_16 : f32 to vector<8x1xf32>
    %51 = arith.select %41, %23, %50 : vector<8x1xi1>, vector<8x1xf32>
    %52 = vector.shape_cast %51 : vector<8x1xf32> to vector<1x8x1xf32>
    %cst_17 = arith.constant dense<0.000000e+00> : vector<1xf32>
    %53 = vector.multi_reduction <add>, %52, %cst_17 [1, 2] : vector<1x8x1xf32> to vector<1xf32>
    %54 = vector.shape_cast %53 : vector<1xf32> to vector<1x1x1xf32>
    %55 = vector.extract %54[0, 0, 0] : f32 from vector<1x1x1xf32>
    %56 = tpu.iota {dimensions = array<i32: 0>} : vector<8x128xi32>
    %57 = tpu.iota {dimensions = array<i32: 1>} : vector<8x128xi32>
    %c0_i32 = arith.constant 0 : i32
    %58 = vector.broadcast %c0_i32 : i32 to vector<8x128xi32>
    %59 = arith.cmpi eq, %56, %58 : vector<8x128xi32>
    %c0_i32_18 = arith.constant 0 : i32
    %60 = vector.broadcast %c0_i32_18 : i32 to vector<8x128xi32>
    %61 = arith.cmpi eq, %57, %60 : vector<8x128xi32>
    %62 = arith.andi %59, %61 : vector<8x128xi1>
    %cst_19 = arith.constant 0.000000e+00 : f32
    %63 = vector.broadcast %49 : f32 to vector<8x128xf32>
    %64 = vector.broadcast %cst_19 : f32 to vector<8x128xf32>
    %65 = arith.select %62, %63, %64 : vector<8x128xi1>, vector<8x128xf32>
    %c0_i32_20 = arith.constant 0 : i32
    %66 = vector.broadcast %c0_i32_20 : i32 to vector<8x128xi32>
    %67 = arith.cmpi eq, %56, %66 : vector<8x128xi32>
    %c1_i32 = arith.constant 1 : i32
    %68 = vector.broadcast %c1_i32 : i32 to vector<8x128xi32>
    %69 = arith.cmpi eq, %57, %68 : vector<8x128xi32>
    %70 = arith.andi %67, %69 : vector<8x128xi1>
    %cst_21 = arith.constant 0.000000e+00 : f32
    %71 = vector.broadcast %55 : f32 to vector<8x128xf32>
    %72 = vector.broadcast %cst_21 : f32 to vector<8x128xf32>
    %73 = arith.select %70, %71, %72 : vector<8x128xi1>, vector<8x128xf32>
    %74 = arith.addf %65, %73 : vector<8x128xf32>
    %c0_22 = arith.constant 0 : index
    %c0_23 = arith.constant 0 : index
    %c0_24 = arith.constant 0 : index
    %75 = vector.load %arg4[%c0_22, %c0_23, %c0_24] : memref<1x8x128xf32, #tpu.memory_space<vmem>>, vector<1x8x128xf32>
    %76 = vector.shape_cast %75 : vector<1x8x128xf32> to vector<8x128xf32>
    %77 = vector.shape_cast %74 : vector<8x128xf32> to vector<1x8x128xf32>
    tpu.vector_store %arg4[%c0_22, %c0_23, %c0_24], %77 {strides = array<i32>} : memref<1x8x128xf32, #tpu.memory_space<vmem>>, vector<1x8x128xf32>,
    return
  }
  func.func @transform_0(%arg0: i32) -> (i32, i32) {
    %c0_i32 = arith.constant 0 : i32
    %c0_i32_0 = arith.constant 0 : i32
    return %arg0, %c0_i32 : i32, i32
  }
  func.func @transform_1(%arg0: i32) -> (i32, i32) {
    %c0_i32 = arith.constant 0 : i32
    %c0_i32_0 = arith.constant 0 : i32
    return %arg0, %c0_i32 : i32, i32
  }
  func.func @transform_2(%arg0: i32) -> (i32, i32) {
    %c0_i32 = arith.constant 0 : i32
    %c0_i32_0 = arith.constant 0 : i32
    %c0_i32_1 = arith.constant 0 : i32
    return %c0_i32, %c0_i32_0 : i32, i32
  }
  func.func @transform_3(%arg0: i32) -> (i32, i32, i32) {
    %c0_i32 = arith.constant 0 : i32
    %c0_i32_0 = arith.constant 0 : i32
    %c0_i32_1 = arith.constant 0 : i32
    return %arg0, %c0_i32, %c0_i32_0 : i32, i32, i32
  }
}

</mosaic_0001>

<bundles_post_ra>
// kernel: tpu_custom_call.1
= control target key start
LH: loop header
LB: loop body
LE: loop exit
PB: predicated region body
PF: predicated region fallthrough
CT: control target
= control target key end

     0   :  { %vm24_vm0 = vcmask 130048   ;;  %s201_s0 = inlined_call_operand.vmem [shape: f32[8,16], index: 0, kind: input, shape index: {}]   ;;  %s202_s1 = inlined_call_operand.vmem [shape: s32[8,1], index: 1, kind: input, shape index: {}]   ;;  %s203_s2 = inlined_call_operand.vmem [shape: f32[1,16], index: 2, kind: input, shape index: {}]   ;;  %s204_s3 = inlined_call_operand.hbm [shape: f32[1,8,128], index: 3, kind: output, shape index: {}]  }
   0x1   :  { %v15_v0 = vld [vmem:[%s201_s0] sm:$0xff] }
   0x2   :  { %8 = vsyncpa [#allocation3], 0  ;;  %v25_v1 = vsel %vm24_vm0, %v15_v0, -inf  ;;  %v154_v2 = vmov 0   ;;  %v16_v3 = vld [vmem:[%s202_s1] sm:$0xff]  ;;  %v18_v7 = vlaneseq  ;;  %vm68_vm3 = vcmask 7168  }
   0x3   :  { %123 = vset.pattern.permute.xlu0 %v154_v2  ;;  %v116_v13 = vld [vmem:[%s203_s2] ss:$0 sm:$0xff]  ;;  %vm63_vm2 = vcmp.ne.s32.totalorder %v16_v3, 4294967196  ;;  %s155_s18 = smov [#allocation2]  }
   0x4   :  { %26 = vmax.xlane.f32.xlu0 %v25_v1  ;;  %v19_v8 = vand.u32 127, %v18_v7  ;;  %v59_v49 = vshrl.u32 %v18_v7, 7  ;;  %s108_s19 = sshll.u32 %s155_s18, 4  ;;  %s109_s19 = int_to_ptr.vmem [resolvable:$true] %s108_s19 }
   0x5   :  { %s130_s20 = scalar_lea.vmem %s109_s19, 128  ;;  %p135_p1 = scmp.lt.s32.totalorder %s109_s19, %s109_s19 }
   0x6   :  { %vm91_vm4 = vcmp.eq.s32.totalorder %v59_v49, 0  ;;  %vm92_vm5 = vcmp.eq.s32.totalorder %v19_v8, 0  ;;  %vm96_vm6 = vcmp.eq.s32.totalorder %v19_v8, 1  ;;  %p131_p0 = scmp.ne.s32.totalorder %s109_s19, %s130_s20  ;;  %p136_p2 = scmp.lt.s32.totalorder %s130_s20, %s130_s20 }
   0x7   :  { %vm93_vm7 = vmand %vm91_vm4, %vm92_vm5 }
   0x8   :  { %vm97_vm8 = vmand %vm91_vm4, %vm96_vm6  ;;  %p137_p3 = por %p136_p2, %p135_p1 }
   0xa   :  { %p138_p4 = pnand %p137_p3, %p131_p0 }
  0x1a   :  { %21 = vperm.xlu0 %123, %v16_v3  }
  0x91   :  { %v27_v4 = vpop.xlane.xlu0 %26 }
  0x92   :  { %v28_v5 = vsub.f32 %v15_v0, %v27_v4 }
  0x94   :  { %v29_v6 = vmul.f32 1.442695, %v28_v5 }
  0x96   :  { %124 = vpow2.f32 %v29_v6 }
  0x99   :  { %v22_v9 = vpop.permute.xlu0 %21 }
  0x9a   :  { %vm23_vm1 = vcmp.eq.s32.totalorder %v19_v8, %v22_v9 }
  0x9b   :  { %v36_v11 = vsel %vm23_vm1, %v15_v0, 0.0  ;;  %v46_v15 = vsel %vm23_vm1, %v116_v13, 0.0 }
  0x9c   :  { %v37_v14 = vsel %vm24_vm0, %v36_v11, 0.0  ;;  %v47_v16 = vsel %vm24_vm0, %v46_v15, 0.0 }
  0xa0   :  { %v125_v10 = vpop.eup %124 }
  0xa1   :  { %v31_v12 = vsel %vm24_vm0, %v125_v10, 0.0 }
  0xa2   :  { %32 = vadd.xlane.f32.xlu1 %v31_v12 }
  0xa6   :  { %38 = vadd.xlane.f32.xlu1 %v37_v14 }
  0xaa   :  { %48 = vadd.xlane.f32.xlu1 %v47_v16 }
 0x12f   :  { %v33_v17 = vpop.xlane.xlu1 %32 }
 0x130   :  { %126 = vlog2.f32 %v33_v17 }
 0x133   :  { %v39_v18 = vpop.xlane.xlu1 %38 }
 0x134   :  { %v50_v21 = vsub.f32 %v39_v18, %v27_v4 }
 0x137   :  { %v49_v29 = vpop.xlane.xlu1 %48 }
 0x138   :  { %v80_v33 = vsel %vm63_vm2, %v49_v29, 0.0 }
 0x139   :  { %v81_v34 = vsel %vm68_vm3, %v80_v33, 0.0 }
 0x13a   :  { %v127_v19 = vpop.eup %126 }
 0x13b   :  { %v35_v20 = vmul.f32 0.6931472, %v127_v19 }
 0x13d   :  { %v51_v22 = vsub.f32 %v50_v21, %v35_v20 }
 0x13f   :  { %v52_v23 = vmul.f32 1.442695, %v51_v22 }
 0x141   :  { %128 = vpow2.f32 %v52_v23 }
 0x14b   :  { %v129_v24 = vpop.eup %128 }
 0x14c   :  { %v54_v25 = vsub.f32 1.0, %v129_v24 }
 0x14e   :  { %v55_v26 = vmax.f32 %v54_v25, 0.0 }
 0x150   :  { %v56_v27 = vmul.f32 %v55_v26, %v55_v26 }
 0x152   :  { %v57_v28 = vmul.f32 %v56_v27, %v51_v22 }
 0x154   :  { %v66_v30 = vmul.f32 %v57_v28, %v49_v29 }
 0x156   :  { %v67_v31 = vsel %vm63_vm2, %v66_v30, 0.0 }
 0x157   :  { %v69_v32 = vsel %vm68_vm3, %v67_v31, 0.0 }
 0x158   :  { %70 = vadd.xlane.f32.xlu1 %v69_v32 }
 0x15c   :  { %82 = vadd.xlane.f32.xlu1 %v81_v34 }
 0x1e5   :  { %v71_v35 = vpop.xlane.xlu1 %70 }
 0x1e6   :  { %v72_v36 = vrot.slane %v71_v35, 4 }
 0x1e8   :  { %v73_v37 = vadd.f32 %v72_v36, %v71_v35 }
 0x1e9   :  { %v83_v38 = vpop.xlane.xlu1 %82 }
 0x1ea   :  { %v74_v39 = vrot.slane %v73_v37, 2  ;;  %v84_v40 = vrot.slane %v83_v38, 4 }
 0x1ec   :  { %v85_v41 = vadd.f32 %v84_v40, %v83_v38  ;;  %v75_v42 = vadd.f32 %v74_v39, %v73_v37 }
 0x1ee   :  { %v86_v43 = vrot.slane %v85_v41, 2  ;;  %v76_v44 = vrot.slane %v75_v42, 1 }
 0x1f0   :  { %v87_v45 = vadd.f32 %v86_v43, %v85_v41  ;;  %v77_v46 = vadd.f32 %v76_v44, %v75_v42 }
 0x1f2   :  { %117 = vpush %v77_v46  ;;  %v88_v47 = vrot.slane %v87_v45, 1 }
 0x1f4   :  { %v89_v48 = vadd.f32 %v88_v47, %v87_v45 }
 0x1f6   :  { %119 = vpush %v89_v48 }
 0x223   :  { %s118_s1 = spop %117 }
 0x224   :  { %s79_s2 = ssub.f32 0.0, %s118_s1 }
 0x226   :  { %v94_v50 = vstv %s79_s2 }
 0x227   :  { %s120_s17 = spop %119  ;;  %v95_v52 = vsel %vm93_vm7, %v94_v50, 0.0 }
 0x228   :  { %v98_v51 = vstv %s120_s17 }
 0x229   :  { %v99_v53 = vsel %vm97_vm8, %v98_v51, 0.0 }
 0x22a   :  { %v100_v54 = vadd.f32 %v99_v53, %v95_v52 }
 0x22c   :  { %101 = vst [vmem:[#allocation2] sm:$0xff] %v100_v54 }
 0x22d   :  { %141 = shalt.err (!%p138_p4)
}
 0x22e   :  { %s142_s23 = scalar_lea.hbm %s204_s3, 128 }
 0x22f   :  { %p143_p5 = scmp.ne.s32.totalorder %s204_s3, %s142_s23  ;;  %p146_p6 = scmp.lt.u32.totalorder %s142_s23, %s204_s3 }
 0x231   :  { %p148_p7 = pnand %p146_p6, %p143_p5 }
 0x233   :  { %151 = shalt.err (!%p148_p7)
}
 0x234   :  { %111 = dma.vmem_to_hbm [thread:$0]  %s109_s19, 128, %s204_s3, [#allocation3]  }
 0x235   :  { %152 = dma.done.wait [#allocation3], 128  }
 0x236   :  { %153 = vsyncadd [#allocation3], 4294967168 }
 0x237   :  { %115 = vsyncpa [#allocation3], 1 }

</bundles_post_ra>
